<compile_context>
chip_gen: v5e
topology: v5e:2x2
jax: 0.10.0
libtpu: 0.0.40
codegen_flags: <defaults>
</compile_context>

<pallas_src>
import functools

import jax
import jax.numpy as jnp
from jax.experimental import pallas as pl
from jax.experimental.pallas import tpu as pltpu


def _round_up(x: int, m: int) -> int:
    return ((x + m - 1) // m) * m


def _single_classifier_kernel(xi_ref, xj_ref, wi_ref, wj_ref, b_ref, o_ref):
    # Split matmul == matmul of the concatenated features (no concat needed):
    #   [xi, xj] @ W == xi @ W[:D] + xj @ W[D:]
    z = jnp.dot(xi_ref[...], wi_ref[...], preferred_element_type=jnp.float32)
    z = z + jnp.dot(xj_ref[...], wj_ref[...], preferred_element_type=jnp.float32)
    z = z + b_ref[...]  # (1, out) broadcasts over rows

    # TODO(synk): dropout is a no-op here (inference semantics, training=False).

    # Numerically stable log_softmax over the class (last) dim.
    m = jnp.max(z, axis=-1, keepdims=True)
    lse = m + jnp.log(jnp.sum(jnp.exp(z - m), axis=-1, keepdims=True))
    # NOTE: out_dim << 128 lanes -> masked stores; amortized by the large
    # row tile (fully lane-dense repacking would need a segmented softmax).
    o_ref[...] = (z - lse).astype(o_ref.dtype)


@functools.partial(jax.jit, static_argnames=("max_tile_n",))
def single_classifier_forward(x_i, x_j, weight, bias, *, max_tile_n=512):
    """x_i, x_j: (N, embed_dim) f32; weight: (out, in) PyTorch layout; bias: (out,)."""
    n, d = x_i.shape
    out_dim, in_dim = weight.shape
    assert in_dim == 2 * d, "SingleClassifier expects in_channels == 2 * embed_dim"

    # ---- Tile selection (static, derived from shapes) -----------------------
    if n <= max_tile_n:
        # Small problems: 1 step (whole problem resident in VMEM). Use 2 steps
        # only when each half is still large enough to amortize step overhead
        # (this also feeds both TensorCores on v7x).
        n_steps = 2 if n >= 256 else 1
        tile_n = _round_up(-(-n // n_steps), 8)
    else:
        tile_n = max_tile_n
    n_padded = _round_up(n, tile_n)

    # ---- Wrapper-side layout / dtype prep -----------------------------------
    # bf16 inputs & weights: halves HBM read bytes; MXU accumulates in f32.
    xi = x_i.astype(jnp.bfloat16)
    xj = x_j.astype(jnp.bfloat16)
    if n_padded != n:
        pad = n_padded - n
        xi = jnp.pad(xi, ((0, pad), (0, 0)))
        xj = jnp.pad(xj, ((0, pad), (0, 0)))

    # Pre-split + pre-transpose the weight: (d, out) halves for x_i and x_j.
    w_i = weight[:, :d].astype(jnp.bfloat16).T
    w_j = weight[:, d:].astype(jnp.bfloat16).T
    b2 = bias.reshape(1, out_dim).astype(jnp.float32)

    grid = (n_padded // tile_n,)
    out = pl.pallas_call(
        _single_classifier_kernel,
        out_shape=jax.ShapeDtypeStruct((n_padded, out_dim), jnp.float32),
        grid_spec=pltpu.PrefetchScalarGridSpec(
            num_scalar_prefetch=0,
            grid=grid,
            in_specs=[
                pl.BlockSpec((tile_n, d), lambda i: (i, 0)),      # x_i rows
                pl.BlockSpec((tile_n, d), lambda i: (i, 0)),      # x_j rows
                pl.BlockSpec((d, out_dim), lambda i: (0, 0)),     # W half (i)
                pl.BlockSpec((d, out_dim), lambda i: (0, 0)),     # W half (j)
                pl.BlockSpec((1, out_dim), lambda i: (0, 0)),     # bias
            ],
            out_specs=pl.BlockSpec((tile_n, out_dim), lambda i: (i, 0)),
        ),
        compiler_params=pltpu.CompilerParams(
            dimension_semantics=("parallel",)),
    )(xi, xj, w_i, w_j, b2)

    return out[:n] if n_padded != n else out


def reference_forward(x_i, x_j, weight, bias):
    """Full-precision reference (exact PyTorch semantics)."""
    x = jnp.concatenate([x_i, x_j], axis=-1)
    z = x @ weight.T + bias
    return jax.nn.log_softmax(z, axis=1)


def reference_forward_bf16(x_i, x_j, weight, bias):
    """Reference with the same bf16-input / f32-accumulate precision as the kernel."""
    x = jnp.concatenate(
        [x_i.astype(jnp.bfloat16), x_j.astype(jnp.bfloat16)], axis=-1)
    z = jnp.dot(x, weight.astype(jnp.bfloat16).T,
                preferred_element_type=jnp.float32) + bias
    return jax.nn.log_softmax(z, axis=1)


if __name__ == "__main__":
    # Small shapes consistent with the module: embed_dim=32, outdim_predictor=8,
    # N=16 node pairs, net != 'DGCN' so in_channels = 2 * embed_dim = 64.
    N, EMBED_DIM, OUT_DIM = 16, 32, 8
    IN_DIM = 2 * EMBED_DIM

    key = jax.random.PRNGKey(0)
    k_xi, k_xj, k_w, k_b = jax.random.split(key, 4)

    x_i = jax.random.normal(k_xi, (N, EMBED_DIM), dtype=jnp.float32)
    x_j = jax.random.normal(k_xj, (N, EMBED_DIM), dtype=jnp.float32)

    # Deterministic Linear init (Kaiming-uniform-like bound, as nn.Linear).
    bound = 1.0 / jnp.sqrt(IN_DIM)
    weight = jax.random.uniform(k_w, (OUT_DIM, IN_DIM), jnp.float32, -bound, bound)
    bias = jax.random.uniform(k_b, (OUT_DIM,), jnp.float32, -bound, bound)

    out = single_classifier_forward(x_i, x_j, weight, bias)
    out = jax.block_until_ready(out)
    assert out.shape == (N, OUT_DIM)

    # Tight check against a reference with matching (bf16-input) precision.
    ref_bf16 = reference_forward_bf16(x_i, x_j, weight, bias)
    assert jnp.allclose(out, ref_bf16, atol=1e-4, rtol=1e-4)

    # Loose sanity check against the full-f32 PyTorch-equivalent reference.
    ref_f32 = reference_forward(x_i, x_j, weight, bias)
    assert jnp.allclose(out, ref_f32, atol=5e-2, rtol=5e-2)

    print("KERNEL_OK")
</pallas_src>

<mosaic_0001>
module attributes {stable_mosaic.version = 11 : i64} {
  func.func @_single_classifier_kernel(%arg0: i32, %arg1: memref<16x32xbf16, #tpu.memory_space<vmem>>, %arg2: memref<16x32xbf16, #tpu.memory_space<vmem>>, %arg3: memref<32x8xbf16, #tpu.memory_space<vmem>>, %arg4: memref<32x8xbf16, #tpu.memory_space<vmem>>, %arg5: memref<1x8xf32, #tpu.memory_space<vmem>>, %arg6: memref<16x8xf32, #tpu.memory_space<vmem>>) attributes {dimension_semantics = [#tpu.dimension_semantics<parallel>], iteration_bounds = array<i64: 1>, scalar_prefetch = 0 : i64, scratch_operands = 0 : i64, tpu.core_type = #tpu.core_type<tc>, window_params = [{transform_indices = @transform_0, window_bounds = array<i64: 16, 32>}, {transform_indices = @transform_1, window_bounds = array<i64: 16, 32>}, {pipeline_mode = #tpu.pipeline_mode<synchronous>, transform_indices = @transform_2, window_bounds = array<i64: 32, 8>}, {pipeline_mode = #tpu.pipeline_mode<synchronous>, transform_indices = @transform_3, window_bounds = array<i64: 32, 8>}, {pipeline_mode = #tpu.pipeline_mode<synchronous>, transform_indices = @transform_4, window_bounds = array<i64: 1, 8>}, {transform_indices = @transform_5, window_bounds = array<i64: 16, 8>}]} {
    %c0 = arith.constant 0 : index
    %c0_0 = arith.constant 0 : index
    %0 = vector.load %arg1[%c0, %c0_0] : memref<16x32xbf16, #tpu.memory_space<vmem>>, vector<16x32xbf16>
    %c0_1 = arith.constant 0 : index
    %c0_2 = arith.constant 0 : index
    %1 = vector.load %arg3[%c0_1, %c0_2] : memref<32x8xbf16, #tpu.memory_space<vmem>>, vector<32x8xbf16>
    %cst = arith.constant dense<0.000000e+00> : vector<16x8xf32>
    %2 = tpu.matmul %0, %1, %cst {dimension_numbers = #tpu.dot_dimension_numbers<[1], [0], [0], [1], [0, 0, 1, 1], [], []>} : vector<16x32xbf16>, vector<32x8xbf16>, vector<16x8xf32> -> vector<16x8xf32>
    %c0_3 = arith.constant 0 : index
    %c0_4 = arith.constant 0 : index
    %3 = vector.load %arg2[%c0_3, %c0_4] : memref<16x32xbf16, #tpu.memory_space<vmem>>, vector<16x32xbf16>
    %c0_5 = arith.constant 0 : index
    %c0_6 = arith.constant 0 : index
    %4 = vector.load %arg4[%c0_5, %c0_6] : memref<32x8xbf16, #tpu.memory_space<vmem>>, vector<32x8xbf16>
    %cst_7 = arith.constant dense<0.000000e+00> : vector<16x8xf32>
    %5 = tpu.matmul %3, %4, %cst_7 {dimension_numbers = #tpu.dot_dimension_numbers<[1], [0], [0], [1], [0, 0, 1, 1], [], []>} : vector<16x32xbf16>, vector<32x8xbf16>, vector<16x8xf32> -> vector<16x8xf32>
    %6 = arith.addf %2, %5 : vector<16x8xf32>
    %c0_8 = arith.constant 0 : index
    %c0_9 = arith.constant 0 : index
    %7 = vector.load %arg5[%c0_8, %c0_9] : memref<1x8xf32, #tpu.memory_space<vmem>>, vector<1x8xf32>
    %8 = vector.broadcast %7 : vector<1x8xf32> to vector<16x8xf32>
    %9 = arith.addf %6, %8 : vector<16x8xf32>
    %cst_10 = arith.constant dense<0xFF800000> : vector<16xf32>
    %10 = vector.multi_reduction <maximumf>, %9, %cst_10 [1] : vector<16x8xf32> to vector<16xf32>
    %11 = vector.shape_cast %10 : vector<16xf32> to vector<16x1xf32>
    %12 = vector.broadcast %11 : vector<16x1xf32> to vector<16x8xf32>
    %13 = arith.subf %9, %12 : vector<16x8xf32>
    %14 = math.exp %13 : vector<16x8xf32>
    %cst_11 = arith.constant dense<0.000000e+00> : vector<16xf32>
    %15 = vector.multi_reduction <add>, %14, %cst_11 [1] : vector<16x8xf32> to vector<16xf32>
    %16 = vector.shape_cast %15 : vector<16xf32> to vector<16x1xf32>
    %17 = math.log %16 : vector<16x1xf32>
    %18 = arith.addf %11, %17 : vector<16x1xf32>
    %19 = vector.broadcast %18 : vector<16x1xf32> to vector<16x8xf32>
    %20 = arith.subf %9, %19 : vector<16x8xf32>
    %c0_12 = arith.constant 0 : index
    %c0_13 = arith.constant 0 : index
    %21 = vector.load %arg6[%c0_12, %c0_13] : memref<16x8xf32, #tpu.memory_space<vmem>>, vector<16x8xf32>
    tpu.vector_store %arg6[%c0_12, %c0_13], %20 {strides = array<i32>} : memref<16x8xf32, #tpu.memory_space<vmem>>, vector<16x8xf32>,
    return
  }
  func.func @transform_0(%arg0: i32) -> (i32, i32) {
    %c0_i32 = arith.constant 0 : i32
    %c0_i32_0 = arith.constant 0 : i32
    return %arg0, %c0_i32 : i32, i32
  }
  func.func @transform_1(%arg0: i32) -> (i32, i32) {
    %c0_i32 = arith.constant 0 : i32
    %c0_i32_0 = arith.constant 0 : i32
    return %arg0, %c0_i32 : i32, i32
  }
  func.func @transform_2(%arg0: i32) -> (i32, i32) {
    %c0_i32 = arith.constant 0 : i32
    %c0_i32_0 = arith.constant 0 : i32
    %c0_i32_1 = arith.constant 0 : i32
    return %c0_i32, %c0_i32_0 : i32, i32
  }
  func.func @transform_3(%arg0: i32) -> (i32, i32) {
    %c0_i32 = arith.constant 0 : i32
    %c0_i32_0 = arith.constant 0 : i32
    %c0_i32_1 = arith.constant 0 : i32
    return %c0_i32, %c0_i32_0 : i32, i32
  }
  func.func @transform_4(%arg0: i32) -> (i32, i32) {
    %c0_i32 = arith.constant 0 : i32
    %c0_i32_0 = arith.constant 0 : i32
    %c0_i32_1 = arith.constant 0 : i32
    return %c0_i32, %c0_i32_0 : i32, i32
  }
  func.func @transform_5(%arg0: i32) -> (i32, i32) {
    %c0_i32 = arith.constant 0 : i32
    %c0_i32_0 = arith.constant 0 : i32
    return %arg0, %c0_i32 : i32, i32
  }
}

</mosaic_0001>

<bundles_post_ra>
// kernel: single_classifier_forward.1
= control target key start
LH: loop header
LB: loop body
LE: loop exit
PB: predicated region body
PF: predicated region fallthrough
CT: control target
= control target key end

     0   :  { %vm50_vm0 = vcmask 261120   ;;  %vm108_vm1 = vcmask 64512   ;;  %s245_s3 = inlined_call_operand.vmem [shape: bf16[32,8], index: 3, kind: input, shape index: {}]   ;;  %s246_s2 = inlined_call_operand.vmem [shape: bf16[32,8], index: 2, kind: input, shape index: {}]   ;;  %s247_s1 = inlined_call_operand.vmem [shape: bf16[16,32], index: 1, kind: input, shape index: {}]   ;;  %s248_s0 = inlined_call_operand.vmem [shape: bf16[16,32], index: 0, kind: input, shape index: {}]   ;;  %s249_s4 = inlined_call_operand.vmem [shape: f32[1,8], index: 4, kind: input, shape index: {}]   ;;  %s250_s5 = inlined_call_operand.vmem [shape: f32[16,8], index: 5, kind: output, shape index: {}]  }
   0x1   :  { %v172_v0 = vld [vmem:[%s245_s3 + $0x8] sm:$0xff]  ;;  %v171_v2 = vld [vmem:[%s245_s3] sm:$0xff] }
   0x2   :  { %v169_v1 = vld [vmem:[%s246_s2 + $0x8] sm:$0xff]  ;;  %60 = vmatpush.bf16.msra.mxu0 %v172_v0  ;;  %v168_v3 = vld [vmem:[%s246_s2] sm:$0xff] }
   0x3   :  { %94 = vmatpush.bf16.msra.mxu1 %v169_v1  ;;  %v170_v4 = vld [vmem:[%s247_s1] sm:$0xff] }
   0x4   :  { %v167_v5 = vld [vmem:[%s248_s0] sm:$0xff] }
   0x5   :  { %v173_v6 = vld [vmem:[%s249_s4] ss:$0 sm:$0xff] }
   0x6   :  { %61 = vmatpush.bf16.msra.mxu0 %v171_v2 }
   0x7   :  { %95 = vmatpush.bf16.msra.mxu1 %v168_v3 }
   0x9   :  { %153 = vmatmul.msk.bf16.vlgmr.msra.gmra.mxu0 %vm50_vm0, %v170_v4 }
   0xa   :  { %166 = vmatmul.msk.bf16.vlgmr.msra.gmra.mxu1 %vm50_vm0, %v167_v5 }
  0x86   :  { %v63_v7 = vpop.f32.mrf.mxu0 }
  0x87   :  { %v97_v8 = vpop.f32.mrf.mxu1 }
  0x88   :  { %v98_v9 = vadd.f32 %v97_v8, %v63_v7 }
  0x8a   :  { %v106_v10 = vadd.f32 %v173_v6, %v98_v9 }
  0x8c   :  { %v109_v11 = vsel %vm108_vm1, %v106_v10, -inf }
  0x8d   :  { %110 = vmax.xlane.f32.xlu0 %v109_v11 }
  0x8e   :  { %v65_v12 = vpop.f32.mrf.mxu0 }
  0x8f   :  { %v99_v13 = vpop.f32.mrf.mxu1 }
  0x90   :  { %v100_v14 = vadd.f32 %v99_v13, %v65_v12 }
  0x92   :  { %v107_v15 = vadd.f32 %v173_v6, %v100_v14 }
  0x94   :  { %v112_v16 = vsel %vm108_vm1, %v107_v15, -inf }
  0x95   :  { %113 = vmax.xlane.f32.xlu0 %v112_v16 }
 0x100   :  { %v111_v17 = vpop.xlane.xlu0 %110 }
 0x101   :  { %v115_v18 = vsub.f32 %v106_v10, %v111_v17 }
 0x103   :  { %v117_v19 = vmul.f32 1.442695, %v115_v18 }
 0x105   :  { %174 = vpow2.f32 %v117_v19 }
 0x108   :  { %v114_v20 = vpop.xlane.xlu0 %113 }
 0x109   :  { %v116_v21 = vsub.f32 %v107_v15, %v114_v20 }
 0x10b   :  { %v175_v22 = vpop.eup %174  ;;  %v119_v23 = vmul.f32 1.442695, %v116_v21 }
 0x10c   :  { %v121_v24 = vsel %vm108_vm1, %v175_v22, 0.0 }
 0x10d   :  { %176 = vpow2.f32 %v119_v23  ;;  %122 = vadd.xlane.f32.xlu1 %v121_v24 }
 0x113   :  { %v177_v25 = vpop.eup %176 }
 0x114   :  { %v124_v26 = vsel %vm108_vm1, %v177_v25, 0.0 }
 0x115   :  { %125 = vadd.xlane.f32.xlu1 %v124_v26 }
 0x180   :  { %v123_v27 = vpop.xlane.xlu1 %122 }
 0x181   :  { %178 = vlog2.f32 %v123_v27 }
 0x187   :  { %v179_v28 = vpop.eup %178 }
 0x188   :  { %v128_v29 = vmul.f32 0.6931472, %v179_v28  ;;  %v126_v30 = vpop.xlane.xlu1 %125 }
 0x189   :  { %180 = vlog2.f32 %v126_v30 }
 0x18a   :  { %v131_v31 = vadd.f32 %v128_v29, %v111_v17 }
 0x18c   :  { %v133_v32 = vsub.f32 %v106_v10, %v131_v31 }
 0x18e   :  { %135 = vst.msk [vmem:[%s250_s5] sm:$0xff] %vm108_vm1, %v133_v32 }
 0x18f   :  { %v181_v33 = vpop.eup %180 }
 0x190   :  { %v130_v34 = vmul.f32 0.6931472, %v181_v33 }
 0x192   :  { %v132_v35 = vadd.f32 %v130_v34, %v114_v20 }
 0x194   :  { %v134_v36 = vsub.f32 %v107_v15, %v132_v35 }
 0x196   :  { %136 = vst.msk [vmem:[%s250_s5 + $0x8] sm:$0xff] %vm108_vm1, %v134_v36 }

</bundles_post_ra>
